<compile_context>
chip_gen: v6e
topology: v6e:2x2x1
jax: 0.10.0
libtpu: 0.0.40
codegen_flags: <defaults>
</compile_context>

<pallas_src>
import numpy as np
import jax
import jax.numpy as jnp
from jax.experimental import pallas as pl
from jax.experimental.pallas import tpu as pltpu


def _mlp_kernel(xt_ref, w1_ref, b1_ref, w2_ref, b2_ref, w3_ref, b3_ref, o_ref):
    xt = xt_ref[...]                                                   # (3, TN)

    # layer 1: (15, 3) @ (3, TN) -> (15, TN); bias (15, 1) broadcasts along lanes
    h1 = jnp.dot(w1_ref[...], xt, preferred_element_type=jnp.float32) + b1_ref[...]
    h1 = jax.nn.sigmoid(h1)                                            # (15, TN)

    # layer 2: (8, 15) @ (15, TN) -> (8, TN)
    h2 = jnp.dot(w2_ref[...], h1, preferred_element_type=jnp.float32) + b2_ref[...]
    h2 = jax.nn.sigmoid(h2)                                            # (8, TN)

    # layer 3: (1, 8) @ (8, TN) -> (1, TN); lane-dense output, no activation
    o_ref[...] = jnp.dot(w3_ref[...], h2, preferred_element_type=jnp.float32) + b3_ref[...]


def _round_up(a, b):
    return (a + b - 1) // b * b


def mlp_regression_forward(x, params, *, tile_n=2048):
    """x: (N, 3) float. params: dict of PyTorch-layout weights/biases (see make_params)."""
    n = x.shape[0]
    w1, b1, w2, b2, w3, b3 = (
        params["w1"], params["b1"], params["w2"],
        params["b2"], params["w3"], params["b3"],
    )

    # Put the batch on the lane (last) axis and pad to a multiple of the lane tile.
    tn = min(tile_n, _round_up(max(n, 1), 128))        # lane tile, multiple of 128
    n_pad = _round_up(n, tn)
    xt = jnp.pad(x.astype(jnp.float32).T, ((0, 0), (0, n_pad - n)))    # (3, n_pad)

    grid = (n_pad // tn,)
    # Constant index_map => parameter blocks are fetched once, stay VMEM-resident.
    resident = lambda a: pl.BlockSpec(a.shape, lambda i: (0, 0))

    out = pl.pallas_call(
        _mlp_kernel,
        out_shape=jax.ShapeDtypeStruct((1, n_pad), jnp.float32),
        grid=grid,
        in_specs=[
            pl.BlockSpec((3, tn), lambda i: (0, i)),   # streamed, lane-dense input tile
            resident(w1), resident(b1),
            resident(w2), resident(b2),
            resident(w3), resident(b3),
        ],
        out_specs=pl.BlockSpec((1, tn), lambda i: (0, i)),  # lane-dense output tile
        compiler_params=pltpu.CompilerParams(dimension_semantics=("parallel",)),
    )(xt, w1, b1, w2, b2, w3, b3)

    return out[0, :n]                                  # matches output[:, 0] in PyTorch


def make_params(p):
    """Mirror MLPregression.__init__ slicing of the flat parameter vector p (197,).

    Weights keep the PyTorch (out, in) layout because the kernel computes W @ X^T;
    biases become (out, 1) columns so they broadcast along the lane (batch) axis.
    """
    p = jnp.asarray(p, dtype=jnp.float32)
    return {
        "w1": p[0:45].reshape(15, 3),   "b1": p[45:60].reshape(15, 1),
        "w2": p[60:180].reshape(8, 15), "b2": p[180:188].reshape(8, 1),
        "w3": p[188:196].reshape(1, 8), "b3": p[196:197].reshape(1, 1),
    }


def reference_forward(x, p):
    """Plain-JAX reference replicating the PyTorch forward, for validation."""
    p = jnp.asarray(p, dtype=jnp.float32)
    w1 = p[0:45].reshape(15, 3); b1 = p[45:60]
    w2 = p[60:180].reshape(8, 15); b2 = p[180:188]
    w3 = p[188:196].reshape(1, 8); b3 = p[196:197]
    h1 = jax.nn.sigmoid(x @ w1.T + b1)
    h2 = jax.nn.sigmoid(h1 @ w2.T + b2)
    return (h2 @ w3.T + b3)[:, 0]


if __name__ == "__main__":
    key = jax.random.PRNGKey(0)
    k_p, k_x, k_x2 = jax.random.split(key, 3)

    # Deterministic synthetic flat parameter vector (197 values, as in the module).
    p = jax.random.normal(k_p, (197,), dtype=jnp.float32) * 0.5
    params = make_params(p)

    # Small batch of inputs with 3 features each (single 128-lane tile after padding).
    x = jax.random.normal(k_x, (8, 3), dtype=jnp.float32)
    y = jax.block_until_ready(mlp_regression_forward(x, params))
    np.testing.assert_allclose(np.asarray(y), np.asarray(reference_forward(x, p)),
                               rtol=1e-5, atol=1e-5)

    # Ragged, multi-tile batch to exercise the grid + padding path (grid=(3,)).
    x2 = jax.random.normal(k_x2, (300, 3), dtype=jnp.float32)
    y2 = jax.block_until_ready(mlp_regression_forward(x2, params, tile_n=128))
    np.testing.assert_allclose(np.asarray(y2), np.asarray(reference_forward(x2, p)),
                               rtol=1e-5, atol=1e-5)

    print("KERNEL_OK")
</pallas_src>

<mosaic_0001>
module attributes {stable_mosaic.version = 11 : i64} {
  func.func @_mlp_kernel(%arg0: i32, %arg1: memref<3x128xf32, #tpu.memory_space<vmem>>, %arg2: memref<15x3xf32, #tpu.memory_space<vmem>>, %arg3: memref<15x1xf32, #tpu.memory_space<vmem>>, %arg4: memref<8x15xf32, #tpu.memory_space<vmem>>, %arg5: memref<8x1xf32, #tpu.memory_space<vmem>>, %arg6: memref<1x8xf32, #tpu.memory_space<vmem>>, %arg7: memref<1x1xf32, #tpu.memory_space<vmem>>, %arg8: memref<1x128xf32, #tpu.memory_space<vmem>>) attributes {dimension_semantics = [#tpu.dimension_semantics<parallel>], iteration_bounds = array<i64: 1>, scalar_prefetch = 0 : i64, scratch_operands = 0 : i64, tpu.core_type = #tpu.core_type<tc>, window_params = [{transform_indices = @transform_0, window_bounds = array<i64: 3, 128>}, {pipeline_mode = #tpu.pipeline_mode<synchronous>, transform_indices = @transform_1, window_bounds = array<i64: 15, 3>}, {pipeline_mode = #tpu.pipeline_mode<synchronous>, transform_indices = @transform_2, window_bounds = array<i64: 15, 1>}, {pipeline_mode = #tpu.pipeline_mode<synchronous>, transform_indices = @transform_3, window_bounds = array<i64: 8, 15>}, {pipeline_mode = #tpu.pipeline_mode<synchronous>, transform_indices = @transform_4, window_bounds = array<i64: 8, 1>}, {pipeline_mode = #tpu.pipeline_mode<synchronous>, transform_indices = @transform_5, window_bounds = array<i64: 1, 8>}, {pipeline_mode = #tpu.pipeline_mode<synchronous>, transform_indices = @transform_6, window_bounds = array<i64: 1, 1>}, {transform_indices = @transform_7, window_bounds = array<i64: 1, 128>}]} {
    %c0 = arith.constant 0 : index
    %c0_0 = arith.constant 0 : index
    %0 = vector.load %arg1[%c0, %c0_0] : memref<3x128xf32, #tpu.memory_space<vmem>>, vector<3x128xf32>
    %c0_1 = arith.constant 0 : index
    %c0_2 = arith.constant 0 : index
    %1 = vector.load %arg2[%c0_1, %c0_2] : memref<15x3xf32, #tpu.memory_space<vmem>>, vector<15x3xf32>
    %cst = arith.constant dense<0.000000e+00> : vector<15x128xf32>
    %2 = tpu.matmul %1, %0, %cst {dimension_numbers = #tpu.dot_dimension_numbers<[1], [0], [0], [1], [0, 0, 1, 1], [], []>} : vector<15x3xf32>, vector<3x128xf32>, vector<15x128xf32> -> vector<15x128xf32>
    %c0_3 = arith.constant 0 : index
    %c0_4 = arith.constant 0 : index
    %3 = vector.load %arg3[%c0_3, %c0_4] : memref<15x1xf32, #tpu.memory_space<vmem>>, vector<15x1xf32>
    %4 = vector.broadcast %3 : vector<15x1xf32> to vector<15x128xf32>
    %5 = arith.addf %2, %4 : vector<15x128xf32>
    %6 = arith.negf %5 : vector<15x128xf32>
    %7 = math.exp %6 : vector<15x128xf32>
    %cst_5 = arith.constant 1.000000e+00 : f32
    %8 = vector.broadcast %cst_5 : f32 to vector<15x128xf32>
    %9 = arith.addf %8, %7 : vector<15x128xf32>
    %10 = arith.divf %8, %9 : vector<15x128xf32>
    %c0_6 = arith.constant 0 : index
    %c0_7 = arith.constant 0 : index
    %11 = vector.load %arg4[%c0_6, %c0_7] : memref<8x15xf32, #tpu.memory_space<vmem>>, vector<8x15xf32>
    %cst_8 = arith.constant dense<0.000000e+00> : vector<8x128xf32>
    %12 = tpu.matmul %11, %10, %cst_8 {dimension_numbers = #tpu.dot_dimension_numbers<[1], [0], [0], [1], [0, 0, 1, 1], [], []>} : vector<8x15xf32>, vector<15x128xf32>, vector<8x128xf32> -> vector<8x128xf32>
    %c0_9 = arith.constant 0 : index
    %c0_10 = arith.constant 0 : index
    %13 = vector.load %arg5[%c0_9, %c0_10] : memref<8x1xf32, #tpu.memory_space<vmem>>, vector<8x1xf32>
    %14 = vector.broadcast %13 : vector<8x1xf32> to vector<8x128xf32>
    %15 = arith.addf %12, %14 : vector<8x128xf32>
    %16 = arith.negf %15 : vector<8x128xf32>
    %17 = math.exp %16 : vector<8x128xf32>
    %cst_11 = arith.constant 1.000000e+00 : f32
    %18 = vector.broadcast %cst_11 : f32 to vector<8x128xf32>
    %19 = arith.addf %18, %17 : vector<8x128xf32>
    %20 = arith.divf %18, %19 : vector<8x128xf32>
    %c0_12 = arith.constant 0 : index
    %c0_13 = arith.constant 0 : index
    %21 = vector.load %arg6[%c0_12, %c0_13] : memref<1x8xf32, #tpu.memory_space<vmem>>, vector<1x8xf32>
    %cst_14 = arith.constant dense<0.000000e+00> : vector<1x128xf32>
    %22 = tpu.matmul %21, %20, %cst_14 {dimension_numbers = #tpu.dot_dimension_numbers<[1], [0], [0], [1], [0, 0, 1, 1], [], []>} : vector<1x8xf32>, vector<8x128xf32>, vector<1x128xf32> -> vector<1x128xf32>
    %c0_15 = arith.constant 0 : index
    %c0_16 = arith.constant 0 : index
    %23 = vector.load %arg7[%c0_15, %c0_16] : memref<1x1xf32, #tpu.memory_space<vmem>>, vector<1x1xf32>
    %24 = vector.broadcast %23 : vector<1x1xf32> to vector<1x128xf32>
    %25 = arith.addf %22, %24 : vector<1x128xf32>
    %c0_17 = arith.constant 0 : index
    %c0_18 = arith.constant 0 : index
    %26 = vector.load %arg8[%c0_17, %c0_18] : memref<1x128xf32, #tpu.memory_space<vmem>>, vector<1x128xf32>
    tpu.vector_store %arg8[%c0_17, %c0_18], %25 {strides = array<i32>} : memref<1x128xf32, #tpu.memory_space<vmem>>, vector<1x128xf32>,
    return
  }
  func.func @transform_0(%arg0: i32) -> (i32, i32) {
    %c0_i32 = arith.constant 0 : i32
    %c0_i32_0 = arith.constant 0 : i32
    return %c0_i32, %arg0 : i32, i32
  }
  func.func @transform_1(%arg0: i32) -> (i32, i32) {
    %c0_i32 = arith.constant 0 : i32
    %c0_i32_0 = arith.constant 0 : i32
    %c0_i32_1 = arith.constant 0 : i32
    return %c0_i32, %c0_i32_0 : i32, i32
  }
  func.func @transform_2(%arg0: i32) -> (i32, i32) {
    %c0_i32 = arith.constant 0 : i32
    %c0_i32_0 = arith.constant 0 : i32
    %c0_i32_1 = arith.constant 0 : i32
    return %c0_i32, %c0_i32_0 : i32, i32
  }
  func.func @transform_3(%arg0: i32) -> (i32, i32) {
    %c0_i32 = arith.constant 0 : i32
    %c0_i32_0 = arith.constant 0 : i32
    %c0_i32_1 = arith.constant 0 : i32
    return %c0_i32, %c0_i32_0 : i32, i32
  }
  func.func @transform_4(%arg0: i32) -> (i32, i32) {
    %c0_i32 = arith.constant 0 : i32
    %c0_i32_0 = arith.constant 0 : i32
    %c0_i32_1 = arith.constant 0 : i32
    return %c0_i32, %c0_i32_0 : i32, i32
  }
  func.func @transform_5(%arg0: i32) -> (i32, i32) {
    %c0_i32 = arith.constant 0 : i32
    %c0_i32_0 = arith.constant 0 : i32
    %c0_i32_1 = arith.constant 0 : i32
    return %c0_i32, %c0_i32_0 : i32, i32
  }
  func.func @transform_6(%arg0: i32) -> (i32, i32) {
    %c0_i32 = arith.constant 0 : i32
    %c0_i32_0 = arith.constant 0 : i32
    %c0_i32_1 = arith.constant 0 : i32
    return %c0_i32, %c0_i32_0 : i32, i32
  }
  func.func @transform_7(%arg0: i32) -> (i32, i32) {
    %c0_i32 = arith.constant 0 : i32
    %c0_i32_0 = arith.constant 0 : i32
    return %c0_i32, %arg0 : i32, i32
  }
}

</mosaic_0001>

<bundles_post_ra>
// kernel: tpu_custom_call.1
= control target key start
LH: loop header
LB: loop body
LE: loop exit
PB: predicated region body
PF: predicated region fallthrough
CT: control target
= control target key end

     0   :  { %s481_s0 = inlined_call_operand.vmem [shape: f32[3,128], index: 0, kind: input, shape index: {}]   ;;  %s482_s1 = inlined_call_operand.vmem [shape: f32[15,3], index: 1, kind: input, shape index: {}]   ;;  %s483_s2 = inlined_call_operand.vmem [shape: f32[15,1], index: 2, kind: input, shape index: {}]   ;;  %s484_s3 = inlined_call_operand.vmem [shape: f32[8,15], index: 3, kind: input, shape index: {}]   ;;  %s485_s4 = inlined_call_operand.vmem [shape: f32[8,1], index: 4, kind: input, shape index: {}]   ;;  %s486_s5 = inlined_call_operand.vmem [shape: f32[1,8], index: 5, kind: input, shape index: {}]   ;;  %s487_s6 = inlined_call_operand.<no memory space> [shape: f32[1,1], index: 6, kind: input, shape index: {}]   ;;  %s488_s7 = inlined_call_operand.hbm [shape: f32[1,128], index: 7, kind: output, shape index: {}]  }
   0x1   :  { %v12_v0 = vstv %s487_s6 }
   0x2   :  { %13 = vst [vmem:[#allocation2] sm:$0x1] %v12_v0 }
   0x3   :  { %v29_v1 = vld [vmem:[%s481_s0] sm:$0x7]  ;;  %vm51_vm0 = vcmask 1042432   ;;  %vm44_vm1 = vcmask 23552   ;;  %v31_v3 = vld [vmem:[%s482_s1 + $0x8] sm:$0x7f] }
   0x4   :  { %v30_v2 = vld [vmem:[%s482_s1] sm:$0xff]  ;;  %350 = vmatprep.subr.msk.mxu0 %vm51_vm0, %v29_v1  ;;  %v33_v4 = vld [vmem:[%s483_s2 + $0x8] sm:$0x7f]  ;;  %v407_v5 = vmov 0  }
   0x5   :  { %352 = vmatprep.mubr.msk.f32.mxu0 %vm44_vm1, %v30_v2  ;;  %351 = vmatpush3.msk.msra.mxu0 %vm51_vm0, %v29_v1 }
   0x6   :  { %371 = vset.pattern.permute.xlu0 %v407_v5 }
   0x7   :  { %14 = vsyncpa [#allocation4], 0  ;;  %353 = vmatmul.mubr.msk.f32.vlgmr.msra.gmra.mxu0 %vm44_vm1, %v31_v3  ;;  %41 = vperm.xlu0 %371, %v33_v4   ;;  %v32_v6 = vld [vmem:[%s483_s2] sm:$0xff]  ;;  %v408_v7 = vmov 0.0   ;;  %vm409_vm2 = vmmov 0   ;;  %vm153_vm3 = vcmask 1046528   ;;  %v240_v34 = vlaneseq }
   0x8   :  { %372 = vset.pattern.permute.xlu1 %v407_v5  ;;  %355 = vmatprep.subr.mxu1 %v408_v7  ;;  %v143_v8 = vld [vmem:[%s485_s4] sm:$0xff]  ;;  %vm149_vm4 = vcmask 121856   ;;  %vm244_vm5 = vcmask 64512  }
   0x9   :  { %362 = vmatprep.subr.mxu0 %v408_v7  ;;  %359 = vmatprep.mubr.msk.f32.mxu1 %vm409_vm2, %v408_v7  ;;  %v234_v9 = vld [vmem:[#allocation2] sm:$0x1]  ;;  %v241_v35 = vshrl.u32 %v240_v34, 7 }
   0xa   :  { %364 = vmatprep.mubr.msk.f32.mxu0 %vm409_vm2, %v408_v7  ;;  %146 = vperm.xlu1 %372, %v143_v8   ;;  %v142_v23 = vld [vmem:[%s484_s3] sm:$0xff]  ;;  %s410_s3 = smov [#allocation3]  }
   0xb   :  { %36 = vperm.xlu0 %371, %v32_v6   ;;  %v233_v32 = vld [vmem:[%s486_s5] sm:$0x1]  ;;  %v242_v36 = vsub.s32 0, %v241_v35  ;;  %s325_s14 = sshll.u32 %s410_s3, 4  ;;  %s326_s14 = int_to_ptr.vmem [resolvable:$true] %s325_s14 }
   0xc   :  { %s385_s15 = scalar_lea.vmem %s326_s14, 16  ;;  %s389_s16 = scalar_lea.vmem %s326_s14, 32 }
   0xd   :  { %p386_p0 = scmp.ne.s32.totalorder %s326_s14, %s385_s15  ;;  %p390_p1 = scmp.lt.s32.totalorder %s326_s14, %s326_s14 }
   0xe   :  { %237 = vperm.xlu1 %372, %v234_v9   ;;  %p391_p2 = scmp.lt.s32.totalorder %s389_s16, %s385_s15 }
  0x10   :  { %p392_p3 = por %p391_p2, %p390_p1 }
  0x12   :  { %p393_p4 = pnand %p392_p3, %p386_p0 }
  0x82   :  { %v42_v10 = vpop.permute.xlu0 %41 }
  0x85   :  { %v147_v25 = vpop.permute.xlu1 %146 }
  0x86   :  { %v37_v13 = vpop.permute.xlu0 %36 }
  0x89   :  { %v238_v37 = vpop.permute.xlu1 %237 }
  0x8a   :  { %v243_v38 = vrot.slane %v238_v37, %v242_v36 }
  0xc7   :  { %v354_v11 = vpop.f32.mrf.mxu0 }
  0xc8   :  { %v127_v12 = vadd.f32 %v354_v11, %v42_v10 }
  0xc9   :  { %v121_v14 = vpop.f32.mrf.mxu0 }
  0xca   :  { %v337_v15 = vmul.f32 -1.442695, %v127_v12  ;;  %v122_v16 = vadd.f32 %v121_v14, %v37_v13 }
  0xcc   :  { %373 = vpow2.f32 %v337_v15  ;;  %v336_v17 = vmul.f32 -1.442695, %v122_v16 }
  0xce   :  { %375 = vpow2.f32 %v336_v17 }
  0xd9   :  { %v374_v18 = vpop.eup %373 }
  0xda   :  { %v137_v19 = vadd.f32 1.0, %v374_v18 }
  0xdb   :  { %v376_v20 = vpop.eup %375 }
  0xdc   :  { %377 = vrcp.f32 %v137_v19  ;;  %v136_v21 = vadd.f32 1.0, %v376_v20 }
  0xde   :  { %379 = vrcp.f32 %v136_v21 }
  0xe9   :  { %v378_v22 = vpop.eup %377 }
  0xea   :  { %356 = vmatpush3.msk.msra.mxu1 %vm153_vm3, %v378_v22 }
  0xeb   :  { %v380_v24 = vpop.eup %379  ;;  %357 = vmatprep.subr.mxu1 %v408_v7 }
  0xec   :  { %358 = vmatpush3.msra.mxu1 %v380_v24 }
  0xed   :  { %360 = vmatmul.mubr.msk.f32.vlgmr.msra.gmra.mxu1 %vm149_vm4, %v142_v23 }
 0x1ad   :  { %v223_v26 = vpop.f32.mrf.mxu1 }
 0x1ae   :  { %v224_v27 = vadd.f32 %v223_v26, %v147_v25 }
 0x1af   :  { %v361_v28 = vpop.f32.mrf.mxu1 }
 0x1b0   :  { %v340_v29 = vmul.f32 -1.442695, %v224_v27 }
 0x1b2   :  { %381 = vpow2.f32 %v340_v29 }
 0x1bf   :  { %v382_v30 = vpop.eup %381 }
 0x1c0   :  { %v230_v31 = vadd.f32 1.0, %v382_v30 }
 0x1c2   :  { %383 = vrcp.f32 %v230_v31 }
 0x1cf   :  { %v384_v33 = vpop.eup %383 }
 0x1d0   :  { %363 = vmatpush3.msra.mxu0 %v384_v33 }
 0x1d1   :  { %365 = vmatmul.mubr.msk.f32.vlgmr.msra.gmra.mxu0 %vm244_vm5, %v233_v32 }
 0x291   :  { %v314_v39 = vpop.f32.mrf.mxu0 }
 0x292   :  { %v315_v40 = vadd.f32 %v314_v39, %v243_v38 }
 0x293   :  { %v366_v41 = vpop.f32.mrf.mxu0 }
 0x294   :  { %318 = vst [vmem:[#allocation3] sm:$0x1] %v315_v40 }
 0x295   :  { %396 = shalt.err (!%p393_p4)
}
 0x296   :  { %328 = dma.vmem_to_hbm [thread:$0]  %s326_s14, 16, %s488_s7, [#allocation4]  }
 0x297   :  { %405 = dma.done.wait [#allocation4], 16  }
 0x298   :  { %406 = vsyncadd [#allocation4], 4294967280 }
 0x299   :  { %332 = vsyncpa [#allocation4], 1 }

</bundles_post_ra>
